<compile_context>
chip_gen: v6e
topology: v6e:2x2x1
jax: 0.10.0
libtpu: 0.0.40
codegen_flags: <defaults>
</compile_context>

<pallas_src>
import jax
import jax.numpy as jnp
from jax.experimental import pallas as pl
from jax.experimental.pallas import tpu as pltpu

LANE = 128      # lane width (gate/hidden axis padding)
SUBLANE = 8     # f32 sublane count (batch padding)
K_ALIGN = 32    # bf16-friendly padding for the contraction dim In+H
GATE_ORDER = ("f", "i", "o", "k")  # 3 sigmoid gates contiguous, tanh gate last


def _round_up(n, m):
    return ((n + m - 1) // m) * m


# ----------------------------------------------------------------------------
# Kernels
# ----------------------------------------------------------------------------
def lstm_cell_kernel(xh_ref, c_ref, w_ref, b_ref, out_ref):
    """Single LSTM step: one fused bf16 MXU matmul + f32 elementwise.

    xh = [x | h] (B, Kp) bf16, W (Kp, 4*Hp) bf16 with gate columns [f|i|o|k],
    c (B, Hp) f32.  Output slab is [o | c_new | h_new] (B, 3*Hp) f32,
    lane-dense (each gate slab is a 128-aligned block).
    """
    hp = c_ref.shape[1]
    pre = jnp.dot(xh_ref[...], w_ref[...],
                  preferred_element_type=jnp.float32) + b_ref[...]
    sig = jax.nn.sigmoid(pre[:, : 3 * hp])     # one wide sigmoid over [f|i|o]
    k = jnp.tanh(pre[:, 3 * hp:])              # (B, Hp)
    f = sig[:, 0:hp]
    i = sig[:, hp:2 * hp]
    o = sig[:, 2 * hp:3 * hp]
    c_new = k * i + f * c_ref[...]
    h_new = o * jnp.tanh(c_new)
    out_ref[:, 0:hp] = o.astype(out_ref.dtype)
    out_ref[:, hp:2 * hp] = c_new.astype(out_ref.dtype)
    out_ref[:, 2 * hp:3 * hp] = h_new.astype(out_ref.dtype)


def lstm_seq_kernel(xproj_ref, wh_ref, c0_ref, h0_ref,
                    o_ref, c_ref, h_ref, h_sc, c_sc):
    """T LSTM steps in one pallas_call (grid=(T,), 'arbitrary').

    xproj_ref : (1, B, 4*Hp) f32  — precomputed x@Wx + b for this timestep.
    wh_ref    : (Hp, 4*Hp)  bf16 — VMEM-resident across all steps (constant index).
    c0/h0     : (B, Hp)     f32  — initial state, read only at t == 0.
    h_sc/c_sc : VMEM scratch carrying the recurrent state across grid steps.
    """
    hp = c0_ref.shape[1]
    t = pl.program_id(0)

    @pl.when(t == 0)
    def _():
        h_sc[...] = h0_ref[...]
        c_sc[...] = c0_ref[...]

    pre = xproj_ref[0] + jnp.dot(h_sc[...].astype(jnp.bfloat16), wh_ref[...],
                                 preferred_element_type=jnp.float32)
    sig = jax.nn.sigmoid(pre[:, : 3 * hp])
    k = jnp.tanh(pre[:, 3 * hp:])
    f = sig[:, 0:hp]
    i = sig[:, hp:2 * hp]
    o = sig[:, 2 * hp:3 * hp]
    c_new = k * i + f * c_sc[...]
    h_new = o * jnp.tanh(c_new)

    c_sc[...] = c_new
    h_sc[...] = h_new
    o_ref[0] = o.astype(o_ref.dtype)
    c_ref[0] = c_new.astype(c_ref.dtype)
    h_ref[0] = h_new.astype(h_ref.dtype)


# ----------------------------------------------------------------------------
# Parameter construction / packing
# ----------------------------------------------------------------------------
def init_params(key, input_length, hidden_length):
    """Per-gate params mimicking nn.Linear U(-1/sqrt(fan_in), 1/sqrt(fan_in)).

    gate -> {wx: (In, H), wh: (H, H), b: (H,)}  (weights already transposed to
    (in_features, out_features); b is the combined bias b_w + b_r).
    """
    ks = jax.random.split(key, 16)
    bound_x = 1.0 / jnp.sqrt(jnp.float32(input_length))
    bound_h = 1.0 / jnp.sqrt(jnp.float32(hidden_length))

    def u(k, shape, bound):
        return jax.random.uniform(k, shape, jnp.float32, -bound, bound)

    params = {}
    for gi, g in enumerate(GATE_ORDER):
        wx = u(ks[4 * gi + 0], (input_length, hidden_length), bound_x)
        bw = u(ks[4 * gi + 1], (hidden_length,), bound_x)
        wh = u(ks[4 * gi + 2], (hidden_length, hidden_length), bound_h)
        br = u(ks[4 * gi + 3], (hidden_length,), bound_h)
        params[g] = {"wx": wx, "wh": wh, "b": bw + br}
    return params


def pack_step_params(params, input_length, hidden_length):
    """Fused single-step layout: W (Kp, 4*Hp) bf16 with Kp = round_up(In+H, 32)
    (review: shrink K padding), b (1, 4*Hp) f32."""
    hp = _round_up(hidden_length, LANE)
    kp = _round_up(input_length + hidden_length, K_ALIGN)
    cols, bcols = [], []
    for g in GATE_ORDER:
        wg = jnp.concatenate([params[g]["wx"], params[g]["wh"]], axis=0)
        wg = jnp.pad(wg, ((0, kp - (input_length + hidden_length)),
                          (0, hp - hidden_length)))
        cols.append(wg)
        bcols.append(jnp.pad(params[g]["b"], (0, hp - hidden_length)))
    w = jnp.concatenate(cols, axis=1)                 # (Kp, 4*Hp)
    b = jnp.concatenate(bcols)[None, :]               # (1, 4*Hp)
    return {"w": w.astype(jnp.bfloat16), "b": b.astype(jnp.float32)}


def pack_seq_params(params, input_length, hidden_length):
    """Sequence layout: Wx (In, 4*Hp) bf16 (used in the hoisted x-projection),
    Wh (Hp, 4*Hp) bf16 (VMEM-resident in-kernel), b (1, 4*Hp) f32."""
    hp = _round_up(hidden_length, LANE)
    wx = jnp.concatenate(
        [jnp.pad(params[g]["wx"], ((0, 0), (0, hp - hidden_length)))
         for g in GATE_ORDER], axis=1)
    wh = jnp.concatenate(
        [jnp.pad(params[g]["wh"], ((0, hp - hidden_length), (0, hp - hidden_length)))
         for g in GATE_ORDER], axis=1)
    b = jnp.concatenate(
        [jnp.pad(params[g]["b"], (0, hp - hidden_length)) for g in GATE_ORDER])[None, :]
    return {"wx": wx.astype(jnp.bfloat16),
            "wh": wh.astype(jnp.bfloat16),
            "b": b.astype(jnp.float32)}


# ----------------------------------------------------------------------------
# Wrappers
# ----------------------------------------------------------------------------
@jax.jit
def lstm_cell_forward(x, c, h, packed):
    """Single-step forward matching LSTMcell.forward: returns (o, c_new, h_new)."""
    B, In = x.shape
    H = h.shape[1]
    kp, four_hp = packed["w"].shape
    hp = four_hp // 4
    bp = _round_up(B, SUBLANE)

    # One concatenate + one pad (review: kill zeros+set round-trips).
    xh = jnp.concatenate([x, h], axis=1).astype(jnp.bfloat16)
    xh = jnp.pad(xh, ((0, bp - B), (0, kp - (In + H))))
    c_pad = jnp.pad(c, ((0, bp - B), (0, hp - H)))

    out = pl.pallas_call(
        lstm_cell_kernel,
        out_shape=jax.ShapeDtypeStruct((bp, 3 * hp), jnp.float32),
        grid=(),
        in_specs=[
            pl.BlockSpec((bp, kp), lambda: (0, 0)),        # xh  (bf16)
            pl.BlockSpec((bp, hp), lambda: (0, 0)),        # c   (f32)
            pl.BlockSpec((kp, four_hp), lambda: (0, 0)),   # W   (bf16)
            pl.BlockSpec((1, four_hp), lambda: (0, 0)),    # b   (f32)
        ],
        out_specs=pl.BlockSpec((bp, 3 * hp), lambda: (0, 0)),
    )(xh, c_pad, packed["w"], packed["b"])

    o = out[:B, 0:H]
    c_new = out[:B, hp:hp + H]
    h_new = out[:B, 2 * hp:2 * hp + H]
    return o, c_new, h_new


@jax.jit
def lstm_sequence_forward(xs, c0, h0, seq_packed):
    """Applies the cell over a sequence in ONE pallas_call (grid=(T,)):
    Wh stays VMEM-resident, h/c carried in VMEM scratch, x-projection hoisted."""
    T, B, In = xs.shape
    H = h0.shape[1]
    hp, four_hp = seq_packed["wh"].shape
    bp = _round_up(B, SUBLANE)

    # Hoisted, non-recurrent x-projection: one big batched matmul (bf16 operands,
    # f32 accumulation), bias folded in.  Done once for all T steps.
    xproj = jnp.einsum("tbi,ij->tbj", xs.astype(jnp.bfloat16), seq_packed["wx"],
                       preferred_element_type=jnp.float32) + seq_packed["b"]
    xproj = jnp.pad(xproj, ((0, 0), (0, bp - B), (0, 0)))
    c0p = jnp.pad(c0, ((0, bp - B), (0, hp - H)))
    h0p = jnp.pad(h0, ((0, bp - B), (0, hp - H)))

    o_seq, c_seq, h_seq = pl.pallas_call(
        lstm_seq_kernel,
        out_shape=(jax.ShapeDtypeStruct((T, bp, hp), jnp.float32),
                   jax.ShapeDtypeStruct((T, bp, hp), jnp.float32),
                   jax.ShapeDtypeStruct((T, bp, hp), jnp.float32)),
        grid_spec=pltpu.PrefetchScalarGridSpec(
            num_scalar_prefetch=0,
            grid=(T,),
            in_specs=[
                pl.BlockSpec((1, bp, four_hp), lambda t: (t, 0, 0)),  # xproj_t
                pl.BlockSpec((hp, four_hp), lambda t: (0, 0)),        # Wh (resident)
                pl.BlockSpec((bp, hp), lambda t: (0, 0)),             # c0 (resident)
                pl.BlockSpec((bp, hp), lambda t: (0, 0)),             # h0 (resident)
            ],
            out_specs=[
                pl.BlockSpec((1, bp, hp), lambda t: (t, 0, 0)),
                pl.BlockSpec((1, bp, hp), lambda t: (t, 0, 0)),
                pl.BlockSpec((1, bp, hp), lambda t: (t, 0, 0)),
            ],
            scratch_shapes=[pltpu.VMEM((bp, hp), jnp.float32),   # h carry
                            pltpu.VMEM((bp, hp), jnp.float32)],  # c carry
        ),
        compiler_params=pltpu.CompilerParams(
            dimension_semantics=("arbitrary",)),   # recurrence: sequential axis
    )(xproj, seq_packed["wh"], c0p, h0p)

    return o_seq[:, :B, :H], c_seq[:, :B, :H], h_seq[:, :B, :H]


# ----------------------------------------------------------------------------
# Pure-JAX reference (same bf16-rounded MXU operands, f32 accumulation)
# ----------------------------------------------------------------------------
def reference_forward(x, c, h, params):
    rd = lambda a: a.astype(jnp.bfloat16).astype(jnp.float32)
    xb, hb = rd(x), rd(h)

    def pre(g):
        p = params[g]
        return xb @ rd(p["wx"]) + hb @ rd(p["wh"]) + p["b"]

    i = jax.nn.sigmoid(pre("i"))
    f = jax.nn.sigmoid(pre("f"))
    k = jnp.tanh(pre("k"))
    o = jax.nn.sigmoid(pre("o"))
    c_new = k * i + f * c
    h_new = o * jnp.tanh(c_new)
    return o, c_new, h_new


if __name__ == "__main__":
    input_length = 3
    hidden_length = 20
    batch = 4
    seq_len = 8

    key = jax.random.PRNGKey(0)
    kx, kc, kh, kparam, kseq = jax.random.split(key, 5)
    x = jax.random.normal(kx, (batch, input_length), jnp.float32)
    c = jax.random.normal(kc, (batch, hidden_length), jnp.float32)
    h = jax.random.normal(kh, (batch, hidden_length), jnp.float32)
    params = init_params(kparam, input_length, hidden_length)

    # --- single-step cell (exact module semantics) ---
    step_packed = pack_step_params(params, input_length, hidden_length)
    o_out, c_out, h_out = lstm_cell_forward(x, c, h, step_packed)
    jax.block_until_ready((o_out, c_out, h_out))

    o_ref, c_ref, h_ref = reference_forward(x, c, h, params)
    assert o_out.shape == (batch, hidden_length)
    assert c_out.shape == (batch, hidden_length)
    assert h_out.shape == (batch, hidden_length)
    assert jnp.allclose(o_out, o_ref, atol=1e-3, rtol=1e-3), "o mismatch"
    assert jnp.allclose(c_out, c_ref, atol=1e-3, rtol=1e-3), "c mismatch"
    assert jnp.allclose(h_out, h_ref, atol=1e-3, rtol=1e-3), "h mismatch"

    # --- sequence-amortized path: T steps, one pallas_call, resident Wh ---
    xs = jax.random.normal(kseq, (seq_len, batch, input_length), jnp.float32)
    seq_packed = pack_seq_params(params, input_length, hidden_length)
    o_seq, c_seq, h_seq = lstm_sequence_forward(xs, c, h, seq_packed)
    jax.block_until_ready((o_seq, c_seq, h_seq))

    cr, hr = c, h
    o_rs, c_rs, h_rs = [], [], []
    for t in range(seq_len):
        orf, cr, hr = reference_forward(xs[t], cr, hr, params)
        o_rs.append(orf)
        c_rs.append(cr)
        h_rs.append(hr)
    o_rs = jnp.stack(o_rs)
    c_rs = jnp.stack(c_rs)
    h_rs = jnp.stack(h_rs)
    assert o_seq.shape == (seq_len, batch, hidden_length)
    assert jnp.allclose(o_seq, o_rs, atol=2e-3, rtol=2e-3), "seq o mismatch"
    assert jnp.allclose(c_seq, c_rs, atol=2e-3, rtol=2e-3), "seq c mismatch"
    assert jnp.allclose(h_seq, h_rs, atol=2e-3, rtol=2e-3), "seq h mismatch"

    print("KERNEL_OK")
</pallas_src>

<mosaic_0001>
module attributes {stable_mosaic.version = 11 : i64} {
  func.func @lstm_cell_kernel(%arg0: memref<8x32xbf16, #tpu.memory_space<vmem>>, %arg1: memref<8x128xf32, #tpu.memory_space<vmem>>, %arg2: memref<32x512xbf16, #tpu.memory_space<vmem>>, %arg3: memref<1x512xf32, #tpu.memory_space<vmem>>, %arg4: memref<8x384xf32, #tpu.memory_space<vmem>>) attributes {dimension_semantics = [], scalar_prefetch = 0 : i64, scratch_operands = 0 : i64, tpu.core_type = #tpu.core_type<tc>} {
    %c0 = arith.constant 0 : index
    %c0_0 = arith.constant 0 : index
    %0 = vector.load %arg0[%c0, %c0_0] : memref<8x32xbf16, #tpu.memory_space<vmem>>, vector<8x32xbf16>
    %c0_1 = arith.constant 0 : index
    %c0_2 = arith.constant 0 : index
    %1 = vector.load %arg2[%c0_1, %c0_2] : memref<32x512xbf16, #tpu.memory_space<vmem>>, vector<32x512xbf16>
    %cst = arith.constant dense<0.000000e+00> : vector<8x512xf32>
    %2 = tpu.matmul %0, %1, %cst {dimension_numbers = #tpu.dot_dimension_numbers<[1], [0], [0], [1], [0, 0, 1, 1], [], []>} : vector<8x32xbf16>, vector<32x512xbf16>, vector<8x512xf32> -> vector<8x512xf32>
    %c0_3 = arith.constant 0 : index
    %c0_4 = arith.constant 0 : index
    %3 = vector.load %arg3[%c0_3, %c0_4] : memref<1x512xf32, #tpu.memory_space<vmem>>, vector<1x512xf32>
    %4 = vector.broadcast %3 : vector<1x512xf32> to vector<8x512xf32>
    %5 = arith.addf %2, %4 : vector<8x512xf32>
    %6 = vector.extract_strided_slice %5 {offsets = [0, 0], sizes = [8, 384], strides = [1, 1]} : vector<8x512xf32> to vector<8x384xf32>
    %7 = arith.negf %6 : vector<8x384xf32>
    %8 = math.exp %7 : vector<8x384xf32>
    %cst_5 = arith.constant 1.000000e+00 : f32
    %9 = vector.broadcast %cst_5 : f32 to vector<8x384xf32>
    %10 = arith.addf %9, %8 : vector<8x384xf32>
    %11 = arith.divf %9, %10 : vector<8x384xf32>
    %12 = vector.extract_strided_slice %5 {offsets = [0, 384], sizes = [8, 128], strides = [1, 1]} : vector<8x512xf32> to vector<8x128xf32>
    %13 = math.tanh %12 : vector<8x128xf32>
    %14 = vector.extract_strided_slice %11 {offsets = [0, 0], sizes = [8, 128], strides = [1, 1]} : vector<8x384xf32> to vector<8x128xf32>
    %15 = vector.extract_strided_slice %11 {offsets = [0, 128], sizes = [8, 128], strides = [1, 1]} : vector<8x384xf32> to vector<8x128xf32>
    %16 = vector.extract_strided_slice %11 {offsets = [0, 256], sizes = [8, 128], strides = [1, 1]} : vector<8x384xf32> to vector<8x128xf32>
    %17 = arith.mulf %13, %15 : vector<8x128xf32>
    %c0_6 = arith.constant 0 : index
    %c0_7 = arith.constant 0 : index
    %18 = vector.load %arg1[%c0_6, %c0_7] : memref<8x128xf32, #tpu.memory_space<vmem>>, vector<8x128xf32>
    %19 = arith.mulf %14, %18 : vector<8x128xf32>
    %20 = arith.addf %17, %19 : vector<8x128xf32>
    %21 = math.tanh %20 : vector<8x128xf32>
    %22 = arith.mulf %16, %21 : vector<8x128xf32>
    %c0_8 = arith.constant 0 : index
    %c0_9 = arith.constant 0 : index
    %23 = vector.load %arg4[%c0_8, %c0_9] : memref<8x384xf32, #tpu.memory_space<vmem>>, vector<8x128xf32>
    tpu.vector_store %arg4[%c0_8, %c0_9], %16 {strides = array<i32>} : memref<8x384xf32, #tpu.memory_space<vmem>>, vector<8x128xf32>,
    %c0_10 = arith.constant 0 : index
    %c128 = arith.constant 128 : index
    %24 = vector.load %arg4[%c0_10, %c128] : memref<8x384xf32, #tpu.memory_space<vmem>>, vector<8x128xf32>
    tpu.vector_store %arg4[%c0_10, %c128], %20 {strides = array<i32>} : memref<8x384xf32, #tpu.memory_space<vmem>>, vector<8x128xf32>,
    %c0_11 = arith.constant 0 : index
    %c256 = arith.constant 256 : index
    %25 = vector.load %arg4[%c0_11, %c256] : memref<8x384xf32, #tpu.memory_space<vmem>>, vector<8x128xf32>
    tpu.vector_store %arg4[%c0_11, %c256], %22 {strides = array<i32>} : memref<8x384xf32, #tpu.memory_space<vmem>>, vector<8x128xf32>,
    return
  }
}

</mosaic_0001>

<bundles_post_ra>
// kernel: lstm_cell_forward.1
= control target key start
LH: loop header
LB: loop body
LE: loop exit
PB: predicated region body
PF: predicated region fallthrough
CT: control target
= control target key end

     0   :  { %9 = vsyncpa [#allocation3], 0  ;;  %s289_s15 = smov [#allocation2]   ;;  %s339_s0 = inlined_call_operand.vmem [shape: bf16[8,32], index: 0, kind: input, shape index: {}]   ;;  %s340_s1 = inlined_call_operand.vmem [shape: f32[8,128], index: 1, kind: input, shape index: {}]   ;;  %s341_s2 = inlined_call_operand.hbm [shape: bf16[32,512], index: 2, kind: input, shape index: {}]   ;;  %s342_s3 = inlined_call_operand.vmem [shape: f32[1,512], index: 3, kind: input, shape index: {}]   ;;  %s343_s4 = inlined_call_operand.vmem [shape: f32[8,384], index: 4, kind: output, shape index: {}]  }
   0x1   :  { %s19_s16 = sshll.u32 %s289_s15, 4  ;;  %s20_s16 = int_to_ptr.vmem [resolvable:$true] %s19_s16 }
   0x2   :  { %s275_s17 = scalar_lea.vmem %s20_s16, 1024  ;;  %p280_p1 = scmp.lt.s32.totalorder %s20_s16, %s20_s16 }
   0x3   :  { %p276_p0 = scmp.ne.s32.totalorder %s20_s16, %s275_s17  ;;  %p281_p2 = scmp.lt.s32.totalorder %s275_s17, %s275_s17 }
   0x5   :  { %p282_p3 = por %p281_p2, %p280_p1 }
   0x7   :  { %p283_p4 = pnand %p282_p3, %p276_p0 }
   0x9   :  { %286 = shalt.err (!%p283_p4)
}
   0xa   :  { %s290_s18 = smov 256   ;;  %s291_s19 = smov 16  }
   0xb   :  { %25 = dma.hbm_to_vmem [thread:$0]  %s341_s2, 1024, %s20_s16, [#allocation3], %s290_s18, %s290_s18, %s291_s19  }
   0xc   :  { %287 = dma.done.wait [#allocation3], 1024  }
   0xd   :  { %288 = vsyncadd [#allocation3], 4294966272  ;;  %v292_v0 = vmov 0   ;;  %v239_v1 = vld [vmem:[#allocation2 + $0x24] ss:$16 sps:$4 sm:$0xff]   ;;  %vm103_vm0 = vcmask 261120   ;;  %v43_v10 = vlaneseq }
   0xe   :  { %139 = vmatprep.mubr.bf16.mxu0 %v292_v0  ;;  %180 = vmatprep.mubr.bf16.mxu1 %v292_v0  ;;  %v241_v2 = vld [vmem:[#allocation2 + $0x20] ss:$16 sps:$4 sm:$0xff]   ;;  %v242_v3 = vld [vmem:[#allocation2 + $0x4] ss:$16 sps:$4 sm:$0xff]   ;;  %v245_v5 = vld [vmem:[#allocation2 + $0x2c] ss:$16 sps:$4 sm:$0xff]  }
   0xf   :  { %119 = vmatprep.subr.bf16.mxu0 %v239_v1  ;;  %v244_v4 = vld [vmem:[#allocation2] ss:$16 sps:$4 sm:$0xff]   ;;  %v247_v6 = vld [vmem:[#allocation2 + $0x28] ss:$16 sps:$4 sm:$0xff]   ;;  %160 = vmatprep.subr.bf16.mxu1 %v245_v5  ;;  %v248_v7 = vld [vmem:[#allocation2 + $0xc] ss:$16 sps:$4 sm:$0xff]  }
  0x10   :  { %120 = vmatpush1.bf16.msra.mxu0 %v241_v2  ;;  %161 = vmatpush1.bf16.msra.mxu1 %v247_v6  ;;  %v250_v8 = vld [vmem:[#allocation2 + $0x8] ss:$16 sps:$4 sm:$0xff]   ;;  %v32_v9 = vld [vmem:[%s339_s0] sm:$0xf]  ;;  %v44_v11 = vshrl.u32 %v43_v10, 7 }
  0x11   :  { %121 = vmatprep.subr.bf16.mxu0 %v242_v3  ;;  %162 = vmatprep.subr.bf16.mxu1 %v248_v7  ;;  %v41_v13 = vld [vmem:[%s342_s3] sm:$0xf] }
  0x12   :  { %v45_v12 = vsub.s32 0, %v44_v11  ;;  %v49_v14 = vsub.s32 1, %v44_v11  ;;  %v53_v15 = vsub.s32 2, %v44_v11  ;;  %v57_v33 = vsub.s32 3, %v44_v11  ;;  %v209_v43 = vld [vmem:[%s340_s1] sm:$0xff] }
  0x14   :  { %122 = vmatpush1.bf16.msra.mxu0 %v244_v4  ;;  %163 = vmatpush1.bf16.msra.mxu1 %v250_v8  ;;  %v46_v16 = vrot.slane %v41_v13, %v45_v12  ;;  %v50_v17 = vrot.slane %v41_v13, %v49_v14  ;;  %v54_v19 = vrot.slane %v41_v13, %v53_v15 }
  0x15   :  { %v58_v34 = vrot.slane %v41_v13, %v57_v33 }
  0x17   :  { %230 = vmatmul.mubr.msk.bf16.vlgmr.msra.gmra.mxu0 %vm103_vm0, %v32_v9  ;;  %231 = vmatmul.mubr.msk.bf16.vlgmr.msra.gmra.mxu1 %vm103_vm0, %v32_v9 }
  0xd7   :  { %v141_v18 = vpop.f32.mrf.mxu0  ;;  %v182_v24 = vpop.f32.mrf.mxu1 }
  0xd8   :  { %v142_v20 = vadd.f32 %v141_v18, %v46_v16  ;;  %v183_v26 = vadd.f32 %v182_v24, %v54_v19 }
  0xd9   :  { %v143_v21 = vpop.f32.mrf.mxu0  ;;  %v184_v28 = vpop.f32.mrf.mxu1 }
  0xda   :  { %v232_v22 = vmul.f32 -1.442695, %v142_v20  ;;  %v144_v23 = vadd.f32 %v143_v21, %v50_v17  ;;  %v234_v30 = vmul.f32 -1.442695, %v183_v26  ;;  %v185_v36 = vadd.f32 %v184_v28, %v58_v34 }
  0xdb   :  { %v145_v25 = vpop.f32.mrf.mxu0  ;;  %v186_v31 = vpop.f32.mrf.mxu1 }
  0xdc   :  { %251 = vpow2.f32 %v232_v22  ;;  %v233_v27 = vmul.f32 -1.442695, %v144_v23 }
  0xdd   :  { %v146_v29 = vpop.f32.mrf.mxu0  ;;  %v187_v32 = vpop.f32.mrf.mxu1 }
  0xde   :  { %253 = vpow2.f32 %v233_v27 }
  0xdf   :  { %255 = vpow2.f32 %v234_v30 }
  0xe9   :  { %v252_v35 = vpop.eup %251 }
  0xea   :  { %v198_v37 = vadd.f32 1.0, %v252_v35 }
  0xeb   :  { %v254_v38 = vpop.eup %253 }
  0xec   :  { %v256_v39 = vpop.eup %255  ;;  %257 = vrcp.f32 %v198_v37  ;;  %v199_v40 = vadd.f32 1.0, %v254_v38 }
  0xed   :  { %v200_v41 = vadd.f32 1.0, %v256_v39  ;;  %259 = vtanh.f32 %v185_v36 }
  0xee   :  { %261 = vrcp.f32 %v199_v40 }
  0xef   :  { %263 = vrcp.f32 %v200_v41 }
  0xf9   :  { %v258_v42 = vpop.eup %257 }
  0xfa   :  { %v260_v44 = vpop.eup %259  ;;  %v210_v48 = vmul.f32 %v258_v42, %v209_v43 }
  0xfb   :  { %v262_v45 = vpop.eup %261 }
  0xfc   :  { %v264_v46 = vpop.eup %263  ;;  %v208_v47 = vmul.f32 %v262_v45, %v260_v44 }
  0xfd   :  { %214 = vst [vmem:[%s343_s4] sm:$0xff] %v264_v46 }
  0xfe   :  { %v211_v49 = vadd.f32 %v210_v48, %v208_v47 }
 0x100   :  { %265 = vtanh.f32 %v211_v49  ;;  %215 = vst [vmem:[%s343_s4 + $0x8] sm:$0xff] %v211_v49 }
 0x10d   :  { %v266_v50 = vpop.eup %265 }
 0x10e   :  { %v213_v51 = vmul.f32 %v266_v50, %v264_v46 }
 0x110   :  { %216 = vst [vmem:[%s343_s4 + $0x10] sm:$0xff] %v213_v51 }
 0x111   :  { %221 = vsyncpa [#allocation3], 1 }

</bundles_post_ra>
